<compile_context>
chip_gen: v7x
topology: tpu7x:2x2x1
jax: 0.10.0
libtpu: 0.0.40
codegen_flags: <defaults>
</compile_context>

<pallas_src>
import functools

import jax
import jax.numpy as jnp
from jax.experimental import pallas as pl
from jax.experimental.pallas import tpu as pltpu


def _round_up(n, m):
    return ((n + m - 1) // m) * m


def _cdiv(a, b):
    return -(-a // b)


def _embedder_kernel(x_ref, scale_ref, phase_ref, o_ref, *, n_groups):
    """One column tile of the embedding, in transposed (rows, lanes) layout.

    x_ref:     (C, TB)           input tile (batch on lanes -> dense vregs)
    scale_ref: (2*N*C, 1)        per-output-row frequency
    phase_ref: (2*N*C, 1)        per-output-row phase (0 for sin, pi/2 for cos)
    o_ref:     ((2*N+1)*C, TB)   output tile, PyTorch row order

    All 2*N frequency/function groups are evaluated by a single fused sin over
    a stacked (2*N*C, TB) operand -> full sublane occupancy on the VALU, and
    the result is written with one aligned full-tile store.
    """
    x = x_ref[...].astype(jnp.float32)                       # (C, TB)
    xg = jnp.concatenate([x] * n_groups, axis=0)             # (2N*C, TB)
    y = jnp.sin(scale_ref[...] * xg + phase_ref[...])        # cos via phase
    o_ref[...] = jnp.concatenate([x, y], axis=0).astype(o_ref.dtype)


def make_embedder(in_channels, N_freqs, logscale=True, block_cols=16384):
    """Returns embed(x) mirroring the PyTorch Embedder.forward semantics."""
    if logscale:
        freq_bands = 2.0 ** jnp.linspace(0.0, N_freqs - 1, N_freqs)
    else:
        freq_bands = jnp.linspace(1.0, 2.0 ** (N_freqs - 1), N_freqs)
    freq_bands = tuple(float(f) for f in freq_bands)

    C = in_channels
    n_groups = 2 * N_freqs                     # sin + cos per frequency
    n_rows = n_groups * C                      # non-identity output rows
    out_channels = C * (n_groups + 1)

    # Per-row scale / phase columns, in PyTorch output-row order:
    #   [sin(f0) x C rows, cos(f0) x C rows, sin(f1) ..., ...]
    half_pi = float(jnp.pi) / 2.0
    scale_rows, phase_rows = [], []
    for f in freq_bands:
        scale_rows += [f] * C + [f] * C
        phase_rows += [0.0] * C + [half_pi] * C
    scale_col = jnp.asarray(scale_rows, jnp.float32).reshape(n_rows, 1)
    phase_col = jnp.asarray(phase_rows, jnp.float32).reshape(n_rows, 1)

    kernel = functools.partial(_embedder_kernel, n_groups=n_groups)

    # Conservative per-call VMEM budget (tiles + f32 intermediates); fits the
    # default scoped VMEM on every generation (16 MiB v5e, 32 MiB v6e/v7x).
    _VMEM_BUDGET = 12 * 1024 * 1024

    def embed(x, *, in_layout="bc", out_layout="bc"):
        if in_layout == "bc":
            B, Cin = x.shape
            xt = x.T                              # (C, B) -- layout plumbing
        else:                                     # "cb": already (C, B)
            Cin, B = x.shape
            xt = x
        assert Cin == C, (Cin, C)

        itemsize = jnp.dtype(x.dtype).itemsize
        # Bytes per lane-column: double-buffered in+out tiles plus the f32
        # intermediates the kernel materializes (x, stacked xg, sin, concat).
        bytes_per_col = (2 * itemsize * (C + out_channels)
                         + 4 * (C + 2 * n_rows + out_channels))
        tb_cap = max(128, (_VMEM_BUDGET // bytes_per_col) // 128 * 128)
        tb_target = max(128, (min(block_cols, tb_cap) // 128) * 128)

        # Pad batch only to a multiple of 128; pick tb as an ~even
        # 128-multiple divisor of the padded batch (no tb-sized over-padding).
        B128 = _round_up(B, 128)
        n_tiles = _cdiv(B128, tb_target)
        if n_tiles == 1 and B128 >= 256:
            n_tiles = 2                          # keep both v7x TCs busy
        tb = _round_up(_cdiv(B128, n_tiles), 128)
        B_pad = tb * n_tiles

        if B_pad != B:
            xt = jnp.pad(xt, ((0, 0), (0, B_pad - B)))

        out_t = pl.pallas_call(
            kernel,
            out_shape=jax.ShapeDtypeStruct((out_channels, B_pad), x.dtype),
            grid_spec=pltpu.PrefetchScalarGridSpec(
                num_scalar_prefetch=0,
                grid=(n_tiles,),
                in_specs=[
                    pl.BlockSpec((C, tb), lambda i: (0, i)),
                    pl.BlockSpec((n_rows, 1), lambda i: (0, 0)),
                    pl.BlockSpec((n_rows, 1), lambda i: (0, 0)),
                ],
                out_specs=pl.BlockSpec((out_channels, tb), lambda i: (0, i)),
            ),
            compiler_params=pltpu.CompilerParams(
                dimension_semantics=("parallel",),   # megacore sharding (v7x)
                vmem_limit_bytes=32 * 1024 * 1024,
            ),
        )(xt, scale_col, phase_col)

        out_t = out_t[:, :B] if B_pad != B else out_t   # slice BEFORE transpose
        if out_layout == "cb":
            return out_t                                # (out_channels, B)
        return out_t.T                                  # (B, out_channels)

    return embed


def embedder_ref(x, N_freqs, logscale=True):
    """Pure-JAX reference mirroring the PyTorch forward."""
    if logscale:
        freq_bands = 2.0 ** jnp.linspace(0.0, N_freqs - 1, N_freqs)
    else:
        freq_bands = jnp.linspace(1.0, 2.0 ** (N_freqs - 1), N_freqs)
    out = [x]
    for f in freq_bands:
        for func in (jnp.sin, jnp.cos):
            out.append(func(f * x))
    return jnp.concatenate(out, axis=-1)


if __name__ == "__main__":
    key = jax.random.PRNGKey(0)

    # Small NeRF-like setup: xyz coordinates, 4 frequency bands.
    in_channels = 3
    N_freqs = 4
    B = 8
    x = jax.random.normal(key, (B, in_channels), dtype=jnp.float32)

    embed = make_embedder(in_channels, N_freqs, logscale=True)
    out = embed(x)
    jax.block_until_ready(out)

    ref = embedder_ref(x, N_freqs, logscale=True)
    assert out.shape == (B, in_channels * (2 * N_freqs + 1)), out.shape
    assert jnp.allclose(out, ref, atol=1e-4, rtol=1e-4), "mismatch vs reference"

    # Transposed output layout (for downstream matmul fusion) -- same kernel.
    out_cb = embed(x, out_layout="cb")
    jax.block_until_ready(out_cb)
    assert out_cb.shape == (in_channels * (2 * N_freqs + 1), B)
    assert jnp.allclose(out_cb.T, ref, atol=1e-4, rtol=1e-4), "cb layout mismatch"

    # Ragged batch (B not a multiple of 128) -> pads to 128-multiple, 2 tiles.
    B2 = 300
    x2 = jax.random.normal(jax.random.PRNGKey(1), (B2, in_channels),
                           dtype=jnp.float32)
    out2 = embed(x2)
    jax.block_until_ready(out2)
    ref2 = embedder_ref(x2, N_freqs, logscale=True)
    assert out2.shape == (B2, in_channels * (2 * N_freqs + 1)), out2.shape
    assert jnp.allclose(out2, ref2, atol=1e-4, rtol=1e-4), "ragged mismatch"

    # Non-f32 input path (f32 compute, cast only at the store), linear bands.
    x3 = x.astype(jnp.bfloat16)
    embed_lin = make_embedder(in_channels, N_freqs, logscale=False)
    out3 = embed_lin(x3)
    jax.block_until_ready(out3)
    ref3 = embedder_ref(x3.astype(jnp.float32), N_freqs, logscale=False)
    assert out3.dtype == jnp.bfloat16
    assert jnp.allclose(out3.astype(jnp.float32), ref3, atol=2e-2, rtol=2e-2)

    print("KERNEL_OK")
</pallas_src>

<mosaic_0001>
module attributes {stable_mosaic.version = 11 : i64} {
  func.func @_embedder_kernel(%arg0: i32, %arg1: memref<3x128xf32, #tpu.memory_space<vmem>>, %arg2: memref<24x1xf32, #tpu.memory_space<vmem>>, %arg3: memref<24x1xf32, #tpu.memory_space<vmem>>, %arg4: memref<27x128xf32, #tpu.memory_space<vmem>>) attributes {dimension_semantics = [#tpu.dimension_semantics<parallel>], iteration_bounds = array<i64: 1>, scalar_prefetch = 0 : i64, scratch_operands = 0 : i64, tpu.core_type = #tpu.core_type<tc>, window_params = [{transform_indices = @transform_0, window_bounds = array<i64: 3, 128>}, {pipeline_mode = #tpu.pipeline_mode<synchronous>, transform_indices = @transform_1, window_bounds = array<i64: 24, 1>}, {pipeline_mode = #tpu.pipeline_mode<synchronous>, transform_indices = @transform_2, window_bounds = array<i64: 24, 1>}, {transform_indices = @transform_3, window_bounds = array<i64: 27, 128>}]} {
    %c0 = arith.constant 0 : index
    %c0_0 = arith.constant 0 : index
    %0 = vector.load %arg1[%c0, %c0_0] : memref<3x128xf32, #tpu.memory_space<vmem>>, vector<3x128xf32>
    %1 = tpu.concatenate %0, %0, %0, %0, %0, %0, %0, %0 in 0 : vector<3x128xf32>, vector<3x128xf32>, vector<3x128xf32>, vector<3x128xf32>, vector<3x128xf32>, vector<3x128xf32>, vector<3x128xf32>, vector<3x128xf32> -> vector<24x128xf32>
    %c0_1 = arith.constant 0 : index
    %c0_2 = arith.constant 0 : index
    %2 = vector.load %arg2[%c0_1, %c0_2] : memref<24x1xf32, #tpu.memory_space<vmem>>, vector<24x1xf32>
    %3 = vector.broadcast %2 : vector<24x1xf32> to vector<24x128xf32>
    %4 = arith.mulf %3, %1 : vector<24x128xf32>
    %c0_3 = arith.constant 0 : index
    %c0_4 = arith.constant 0 : index
    %5 = vector.load %arg3[%c0_3, %c0_4] : memref<24x1xf32, #tpu.memory_space<vmem>>, vector<24x1xf32>
    %6 = vector.broadcast %5 : vector<24x1xf32> to vector<24x128xf32>
    %7 = arith.addf %4, %6 : vector<24x128xf32>
    %8 = math.sin %7 : vector<24x128xf32>
    %9 = tpu.concatenate %0, %8 in 0 : vector<3x128xf32>, vector<24x128xf32> -> vector<27x128xf32>
    %c0_5 = arith.constant 0 : index
    %c0_6 = arith.constant 0 : index
    %10 = vector.load %arg4[%c0_5, %c0_6] : memref<27x128xf32, #tpu.memory_space<vmem>>, vector<27x128xf32>
    tpu.vector_store %arg4[%c0_5, %c0_6], %9 {strides = array<i32>} : memref<27x128xf32, #tpu.memory_space<vmem>>, vector<27x128xf32>,
    return
  }
  func.func @transform_0(%arg0: i32) -> (i32, i32) {
    %c0_i32 = arith.constant 0 : i32
    %c0_i32_0 = arith.constant 0 : i32
    return %c0_i32, %arg0 : i32, i32
  }
  func.func @transform_1(%arg0: i32) -> (i32, i32) {
    %c0_i32 = arith.constant 0 : i32
    %c0_i32_0 = arith.constant 0 : i32
    %c0_i32_1 = arith.constant 0 : i32
    return %c0_i32, %c0_i32_0 : i32, i32
  }
  func.func @transform_2(%arg0: i32) -> (i32, i32) {
    %c0_i32 = arith.constant 0 : i32
    %c0_i32_0 = arith.constant 0 : i32
    %c0_i32_1 = arith.constant 0 : i32
    return %c0_i32, %c0_i32_0 : i32, i32
  }
  func.func @transform_3(%arg0: i32) -> (i32, i32) {
    %c0_i32 = arith.constant 0 : i32
    %c0_i32_0 = arith.constant 0 : i32
    return %c0_i32, %arg0 : i32, i32
  }
}

</mosaic_0001>

<bundles_post_ra>
// kernel: tpu_custom_call.1
= control target key start
LH: loop header
LB: loop body
LE: loop exit
PB: predicated region body
PF: predicated region fallthrough
CT: control target
= control target key end

     0   :  { %v504_v2 = vmov 0   ;;  %s754_s0 = inlined_call_operand.vmem [shape: f32[3,128], index: 0, kind: input, shape index: {}]   ;;  %s755_s1 = inlined_call_operand.vmem [shape: f32[24,1], index: 1, kind: input, shape index: {}]   ;;  %s756_s2 = inlined_call_operand.vmem [shape: f32[24,1], index: 2, kind: input, shape index: {}]   ;;  %s757_s3 = inlined_call_operand.hbm [shape: f32[27,128], index: 3, kind: output, shape index: {}]  }
   0x1   :  { %v47_v0 = vld [vmem:[%s755_s1 + $0x10] sm:$0xff]  ;;  %v45_v1 = vld [vmem:[%s755_s1] sm:$0xff]  ;;  %467 = vset.pattern.permute.xlu1 %v504_v2  ;;  %466 = vset.pattern.permute.xlu0 %v504_v2  ;;  %v46_v4 = vld [vmem:[%s755_s1 + $0x8] sm:$0xff] }
   0x2   :  { %60 = vperm.xlu1 %467, %v47_v0   ;;  %50 = vperm.xlu0 %466, %v45_v1   ;;  %v66_v3 = vld [vmem:[%s756_s2] sm:$0xff] }
   0x3   :  { %8 = vsyncpa [#allocation3], 0  ;;  %v68_v5 = vld [vmem:[%s756_s2 + $0x10] sm:$0xff]  ;;  %v67_v6 = vld [vmem:[%s756_s2 + $0x8] sm:$0xff]  ;;  %vm31_vm0 = vcmask 1042432   ;;  %vm35_vm1 = vcmask 1040384  }
   0x4   :  { %v555_v7 = vld [vmem:[%s754_s0] sm:$0x7]  ;;  %vm33_vm2 = vcmask 1045504   ;;  %vm41_vm3 = vcmask 1041408   ;;  %vm37_vm4 = vcmask 1043456   ;;  %vm43_vm5 = vcmask 1044480  }
   0x5   :  { %v17_v8 = vrot.slane %v555_v7, 5  ;;  %v21_v9 = vrot.slane %v555_v7, 7  ;;  %v19_v10 = vrot.slane %v555_v7, 2  ;;  %v25_v11 = vrot.slane %v555_v7, 1  ;;  %s511_s0 = smov [#allocation2]  }
   0x6   :  { %71 = vperm.xlu1 %467, %v66_v3   ;;  %55 = vperm.xlu0 %466, %v46_v4   ;;  %v27_v12 = vrot.slane %v555_v7, 6  ;;  %v23_v14 = vrot.slane %v555_v7, 4  ;;  %v29_v17 = vrot.slane %v555_v7, 3  ;;  %vm39_vm6 = vcmask 1046528   ;;  %s421_s1 = sshll.u32 %s511_s0, 4  ;;  %s422_s1 = int_to_ptr.vmem [resolvable:$true] %s421_s1 }
   0x7   :  { %v32_v13 = vsel %vm31_vm0, %v555_v7, %v17_v8  ;;  %v36_v15 = vsel %vm35_vm1, %v19_v10, %v21_v9  ;;  %v505_v55 = vmov 683565275   ;;  %v506_v57 = vmov 2475754826   ;;  %s480_s2 = scalar_lea.vmem %s422_s1, 512  ;;  %p485_p1 = scmp.lt.s32.totalorder %s422_s1, %s422_s1 }
   0x8   :  { %v34_v19 = vsel %vm33_vm2, %v32_v13, %v19_v10  ;;  %v42_v20 = vsel %vm41_vm3, %v25_v11, %v27_v12  ;;  %v38_v21 = vsel %vm37_vm4, %v36_v15, %v23_v14  ;;  %v507_v60 = vmov 2131351028   ;;  %p481_p0 = scmp.ne.s32.totalorder %s422_s1, %s480_s2  ;;  %p486_p2 = scmp.lt.s32.totalorder %s480_s2, %s480_s2 }
   0x9   :  { %v44_v23 = vsel %vm43_vm5, %v42_v20, %v29_v17  ;;  %v40_v27 = vsel %vm39_vm6, %v38_v21, %v25_v11  ;;  %v508_v62 = vmov 2102212464   ;;  %v509_v0 = vmov 920167782  }
   0xa   :  { %81 = vperm.xlu1 %467, %v68_v5   ;;  %76 = vperm.xlu0 %466, %v67_v6   ;;  %v510_v8 = vmov 1326507024   ;;  %p487_p3 = por %p486_p2, %p485_p1 }
   0xc   :  { %p488_p4 = pnand %p487_p3, %p481_p0 }
  0x81   :  { %v61_v16 = vpop.permute.xlu1 %60  ;;  %v51_v18 = vpop.permute.xlu0 %50 }
  0x82   :  { %v63_v22 = vmul.f32 %v51_v18, %v34_v19  ;;  %v65_v28 = vmul.f32 %v61_v16, %v44_v23 }
  0x85   :  { %v72_v24 = vpop.permute.xlu1 %71  ;;  %v56_v25 = vpop.permute.xlu0 %55 }
  0x86   :  { %v566_v26 = vadd.f32 %v72_v24, %v63_v22  ;;  %v64_v31 = vmul.f32 %v56_v25, %v40_v27 }
  0x88   :  { %v87_v29 = vand.u32 2147483647, %v566_v26  ;;  %v90_v30 = vand.u32 2139095040, %v566_v26 }
  0x89   :  { %v82_v32 = vpop.permute.xlu1 %81  ;;  %v77_v33 = vpop.permute.xlu0 %76 }
  0x8a   :  { %v91_v34 = vshrl.u32 %v90_v30, 23  ;;  %v570_v35 = vadd.f32 %v82_v32, %v65_v28  ;;  %v94_v36 = vand.u32 8388607, %v87_v29  ;;  %v574_v37 = vadd.f32 %v77_v33, %v64_v31 }
  0x8c   :  { %v432_v38 = vadd.s32 4294967169, %v91_v34  ;;  %v295_v39 = vand.u32 2147483647, %v570_v35  ;;  %v298_v40 = vand.u32 2139095040, %v570_v35  ;;  %v95_v42 = vor.u32 8388608, %v94_v36 }
  0x8d   :  { %v194_v45 = vand.u32 2139095040, %v574_v37 }
  0x8e   :  { %v97_v41 = vadd.s32 1, %v432_v38  ;;  %v299_v43 = vshrl.u32 %v298_v40, 23  ;;  %v302_v44 = vand.u32 8388607, %v295_v39  ;;  %v581_v51 = vshll.u32 %v95_v42, 8 }
  0x8f   :  { %v195_v48 = vshrl.u32 %v194_v45, 23 }
  0x90   :  { %vm98_vm7 = vcmp.gt.s32.totalorder %v97_v41, 0  ;;  %v440_v47 = vadd.s32 4294967169, %v299_v43  ;;  %v303_v52 = vor.u32 8388608, %v302_v44 }
  0x91   :  { %v99_v46 = vsel %vm98_vm7, %v97_v41, 0  ;;  %v436_v59 = vadd.s32 4294967169, %v195_v48 }
  0x92   :  { %v100_v49 = vshrl.u32 %v99_v46, 5  ;;  %v101_v50 = vand.u32 31, %v99_v46  ;;  %v305_v53 = vadd.s32 1, %v440_v47  ;;  %v603_v32 = vshll.u32 %v303_v52, 8 }
  0x93   :  { %v201_v42 = vadd.s32 1, %v436_v59 }
  0x94   :  { %v102_v54 = vsub.s32 32, %v101_v50  ;;  %v104_v56 = vshll.u32 %v505_v55, %v101_v50  ;;  %v107_v58 = vshll.u32 %v506_v57, %v101_v50  ;;  %v110_v61 = vshll.u32 %v507_v60, %v101_v50 }
  0x95   :  { %v113_v63 = vshll.u32 %v508_v62, %v101_v50  ;;  %v116_v1 = vshll.u32 %v509_v0, %v101_v50  ;;  %vm119_vm8 = vcmp.lt.s32.totalorder %v100_v49, 1  ;;  %vm120_vm9 = vcmp.lt.s32.totalorder %v100_v49, 2 }
  0x96   :  { %v105_v2 = vshrl.u32 %v506_v57, %v102_v54  ;;  %v108_v3 = vshrl.u32 %v507_v60, %v102_v54  ;;  %v111_v4 = vshrl.u32 %v508_v62, %v102_v54  ;;  %v103_v5 = vshrl.u32 %v505_v55, %v102_v54 }
  0x97   :  { %v114_v6 = vshrl.u32 %v509_v0, %v102_v54  ;;  %v117_v9 = vshrl.u32 %v510_v8, %v102_v54  ;;  %vm121_vm10 = vcmp.lt.s32.totalorder %v100_v49, 3  ;;  %vm306_vm11 = vcmp.gt.s32.totalorder %v305_v53, 0 }
  0x98   :  { %v106_v10 = vor.u32 %v105_v2, %v104_v56  ;;  %v109_v11 = vor.u32 %v108_v3, %v107_v58  ;;  %v112_v12 = vor.u32 %v111_v4, %v110_v61  ;;  %vm122_vm12 = vcmp.lt.s32.totalorder %v100_v49, 4 }
  0x99   :  { %v115_v13 = vor.u32 %v114_v6, %v113_v63  ;;  %v118_v14 = vor.u32 %v117_v9, %v116_v1  ;;  %v307_v15 = vsel %vm306_vm11, %v305_v53, 0  ;;  %vm202_vm2 = vcmp.gt.s32.totalorder %v201_v42, 0 }
  0x9a   :  { %v123_v16 = vsel %vm119_vm8, %v103_v5, %v106_v10  ;;  %v124_v17 = vsel %vm122_vm12, %v112_v12, 2102212464  ;;  %v127_v18 = vsel %vm119_vm8, %v106_v10, %v109_v11  ;;  %v131_v19 = vsel %vm119_vm8, %v109_v11, %v112_v12 }
  0x9b   :  { %v125_v20 = vsel %vm121_vm10, %v109_v11, %v124_v17  ;;  %v128_v21 = vsel %vm122_vm12, %v115_v13, 920167782  ;;  %v132_v22 = vsel %vm122_vm12, %v118_v14, 1326507024  ;;  %v308_v23 = vshrl.u32 %v307_v15, 5 }
  0x9c   :  { %v126_v24 = vsel %vm120_vm9, %v123_v16, %v125_v20  ;;  %v129_v25 = vsel %vm121_vm10, %v112_v12, %v128_v21  ;;  %v133_v27 = vsel %vm121_vm10, %v115_v13, %v132_v22  ;;  %v309_v28 = vand.u32 31, %v307_v15 }
  0x9d   :  { %v130_v30 = vsel %vm120_vm9, %v127_v18, %v129_v25  ;;  %v134_v31 = vsel %vm120_vm9, %v131_v19, %v133_v27  ;;  %v142_v40 = vmul.u32 %v581_v51, %v126_v24  ;;  %vm327_vm13 = vcmp.lt.s32.totalorder %v308_v23, 1 }
  0x9e   :  { %v606_v33 = vmul.u32.u64.low %v581_v51, %v134_v31  ;;  %v607_v34 = vmul.u32.u64.high %v581_v51, %v134_v31, %v606_v33  ;;  %v610_v36 = vmul.u32.u64.low %v581_v51, %v130_v30  ;;  %v611_v38 = vmul.u32.u64.high %v581_v51, %v130_v30, %v610_v36 }
  0x9f   :  { %v310_v41 = vsub.s32 32, %v309_v28  ;;  %v312_v43 = vshll.u32 %v505_v55, %v309_v28  ;;  %v315_v44 = vshll.u32 %v506_v57, %v309_v28  ;;  %v318_v45 = vshll.u32 %v507_v60, %v309_v28 }
  0xa0   :  { %v321_v46 = vshll.u32 %v508_v62, %v309_v28  ;;  %v324_v50 = vshll.u32 %v509_v0, %v309_v28  ;;  %vm144_vm14 = vc.u32 %v607_v34, %v610_v36  ;;  %v145_v51 = vadd.s32 1, %v611_v38 }
  0xa1   :  { %v313_v47 = vshrl.u32 %v506_v57, %v310_v41  ;;  %v316_v48 = vshrl.u32 %v507_v60, %v310_v41  ;;  %v319_v49 = vshrl.u32 %v508_v62, %v310_v41  ;;  %v322_v52 = vshrl.u32 %v509_v0, %v310_v41 }
  0xa2   :  { %vm328_vm15 = vcmp.lt.s32.totalorder %v308_v23, 2  ;;  %v325_v58 = vshrl.u32 %v510_v8, %v310_v41  ;;  %v146_v59 = vsel %vm144_vm14, %v145_v51, %v611_v38  ;;  %v311_v61 = vshrl.u32 %v505_v55, %v310_v41 }
  0xa3   :  { %v314_v53 = vor.u32 %v313_v47, %v312_v43  ;;  %v317_v54 = vor.u32 %v316_v48, %v315_v44  ;;  %v320_v56 = vor.u32 %v319_v49, %v318_v45  ;;  %v323_v63 = vor.u32 %v322_v52, %v321_v46 }
  0xa4   :  { %vm330_vm1 = vcmp.lt.s32.totalorder %v308_v23, 4  ;;  %v147_v1 = vadd.s32 %v146_v59, %v142_v40  ;;  %v326_v2 = vor.u32 %v325_v58, %v324_v50  ;;  %vm329_vm3 = vcmp.lt.s32.totalorder %v308_v23, 3 }
  0xa5   :  { %v332_v3 = vsel %vm330_vm1, %v320_v56, 2102212464  ;;  %v335_v4 = vsel %vm327_vm13, %v314_v53, %v317_v54  ;;  %v336_v5 = vsel %vm330_vm1, %v323_v63, 920167782  ;;  %v339_v6 = vsel %vm327_vm13, %v317_v54, %v320_v56 }
  0xa6   :  { %v148_v9 = vadd.s32 536870912, %v147_v1  ;;  %v331_v10 = vsel %vm327_vm13, %v311_v61, %v314_v53  ;;  %v337_v11 = vsel %vm329_vm3, %v320_v56, %v336_v5  ;;  %v340_v12 = vsel %vm330_vm1, %v326_v2, 1326507024 }
  0xa7   :  { %v333_v13 = vsel %vm329_vm3, %v317_v54, %v332_v3  ;;  %v338_v14 = vsel %vm328_vm15, %v335_v4, %v337_v11  ;;  %v341_v15 = vsel %vm329_vm3, %v323_v63, %v340_v12  ;;  %v203_v16 = vsel %vm202_vm2, %v201_v42, 0 }
  0xa8   :  { %v634_v17 = vshrl.u32 %v148_v9, 30  ;;  %v342_v18 = vsel %vm328_vm15, %v339_v6, %v341_v15  ;;  %v638_v19 = vmul.u32.u64.low %v603_v32, %v338_v14  ;;  %v639_v20 = vmul.u32.u64.high %v603_v32, %v338_v14, %v638_v19 }
  0xa9   :  { %v643_v21 = vmul.u32.u64.low %v603_v32, %v342_v18  ;;  %v644_v22 = vmul.u32.u64.high %v603_v32, %v342_v18, %v643_v21  ;;  %v205_v24 = vand.u32 31, %v203_v16  ;;  %v334_v27 = vsel %vm328_vm15, %v331_v10, %v333_v13 }
  0xaa   :  { %v150_v25 = vshll.u32 %v634_v17, 30  ;;  %v191_v28 = vand.u32 2147483647, %v574_v37  ;;  %v353_v33 = vadd.s32 1, %v639_v20  ;;  %v350_v38 = vmul.u32 %v603_v32, %v334_v27 }
  0xab   :  { %v206_v30 = vsub.s32 32, %v205_v24  ;;  %vm352_vm4 = vc.u32 %v644_v22, %v638_v19  ;;  %v217_v46 = vshll.u32 %v508_v62, %v205_v24  ;;  %v204_v48 = vshrl.u32 %v203_v16, 5 }
  0xac   :  { %v151_v31 = vsub.s32 %v147_v1, %v150_v25  ;;  %v354_v41 = vsel %vm352_vm4, %v353_v33, %v639_v20  ;;  %v198_v42 = vand.u32 8388607, %v191_v28  ;;  %v208_v52 = vshll.u32 %v505_v55, %v205_v24 }
  0xad   :  { %v355_v43 = vadd.s32 %v354_v41, %v350_v38  ;;  %v218_v23 = vshrl.u32 %v509_v0, %v206_v30  ;;  %v209_v45 = vshrl.u32 %v506_v57, %v206_v30  ;;  %v212_v32 = vshrl.u32 %v507_v60, %v206_v30 }
  0xae   :  { %v153_v40 = vsub.s32 0, %v151_v31  ;;  %v215_v49 = vshrl.u32 %v508_v62, %v206_v30  ;;  %v199_v51 = vor.u32 8388608, %v198_v42  ;;  %v211_v56 = vshll.u32 %v506_v57, %v205_v24 }
  0xaf   :  { %v356_v47 = vadd.s32 536870912, %v355_v43  ;;  %v219_v53 = vor.u32 %v218_v23, %v217_v46  ;;  %v214_v58 = vshll.u32 %v507_v60, %v205_v24  ;;  %v221_v59 = vshrl.u32 %v510_v8, %v206_v30 }
  0xb0   :  { %v433_v44 = vmin.u32 %v153_v40, %v151_v31  ;;  %v210_v63 = vor.u32 %v209_v45, %v208_v52  ;;  %v220_v1 = vshll.u32 %v509_v0, %v205_v24  ;;  %v213_v62 = vor.u32 %v212_v32, %v211_v56 }
  0xb1   :  { %v662_v54 = vshrl.u32 %v356_v47, 30  ;;  %v216_v3 = vor.u32 %v215_v49, %v214_v58  ;;  %vm226_vm5 = vcmp.lt.s32.totalorder %v204_v48, 4  ;;  %v239_v6 = vshll.u32 %v199_v51, 8 }
  0xb2   :  { %v155_v50 = vclz %v433_v44  ;;  %v222_v4 = vor.u32 %v221_v59, %v220_v1  ;;  %v232_v5 = vsel %vm226_vm5, %v219_v53, 920167782  ;;  %v143_v57 = vadd.s32 %v610_v36, %v607_v34 }
  0xb3   :  { %v358_v2 = vshll.u32 %v662_v54, 30  ;;  %v207_v8 = vshrl.u32 %v505_v55, %v206_v30  ;;  %vm223_vm7 = vcmp.lt.s32.totalorder %v204_v48, 1  ;;  %vm225_vm8 = vcmp.lt.s32.totalorder %v204_v48, 3 }
  0xb4   :  { %v434_v61 = vadd.s32 4294967294, %v155_v50  ;;  %v231_v12 = vsel %vm223_vm7, %v210_v63, %v213_v62  ;;  %v233_v13 = vsel %vm225_vm8, %v216_v3, %v232_v5  ;;  %v235_v14 = vsel %vm223_vm7, %v213_v62, %v216_v3 }
  0xb5   :  { %v359_v9 = vsub.s32 %v355_v43, %v358_v2  ;;  %v236_v34 = vsel %vm226_vm5, %v222_v4, 1326507024  ;;  %vm224_vm9 = vcmp.lt.s32.totalorder %v204_v48, 2  ;;  %v228_v55 = vsel %vm226_vm5, %v216_v3, 2102212464 }
  0xb6   :  { %vm435_vm6 = vcmp.lt.s32.totalorder %v434_v61, 0  ;;  %v237_v20 = vsel %vm225_vm8, %v219_v53, %v236_v34  ;;  %v234_v25 = vsel %vm224_vm9, %v231_v12, %v233_v13  ;;  %v227_v33 = vsel %vm223_vm7, %v207_v8, %v210_v63 }
  0xb7   :  { %v158_v60 = vsel %vm435_vm6, 0, %v434_v61  ;;  %v361_v0 = vsub.s32 0, %v359_v9  ;;  %v238_v27 = vsel %vm224_vm9, %v235_v14, %v237_v20  ;;  %v229_v38 = vsel %vm225_vm8, %v213_v62, %v228_v55 }
  0xb8   :  { %v159_v10 = vsub.s32 32, %v158_v60  ;;  %v163_v11 = vsub.s32 4294967266, %v158_v60  ;;  %v160_v15 = vshll.u32 %v151_v31, %v158_v60  ;;  %v173_v46 = vsub.s32 4, %v634_v17 }
  0xb9   :  { %v441_v36 = vmin.u32 %v361_v0, %v359_v9  ;;  %v683_v40 = vmul.u32.u64.low %v239_v6, %v238_v27  ;;  %v684_v41 = vmul.u32.u64.high %v239_v6, %v238_v27, %v683_v40  ;;  %v230_v47 = vsel %vm224_vm9, %v227_v33, %v229_v38 }
  0xba   :  { %v161_v16 = vshrl.u32 %v143_v57, %v159_v10  ;;  %v164_v18 = vadd.s32 127, %v163_v11  ;;  %v686_v43 = vmul.u32.u64.low %v239_v6, %v234_v25  ;;  %v687_v23 = vmul.u32.u64.high %v239_v6, %v234_v25, %v686_v43 }
  0xbb   :  { %v363_v30 = vclz %v441_v36  ;;  %vm89_vm11 = vcmp.lt.s32.totalorder %v566_v26, 0  ;;  %v351_v50 = vadd.s32 %v638_v19, %v644_v22  ;;  %v246_v58 = vmul.u32 %v239_v6, %v230_v47 }
  0xbc   :  { %v162_v21 = vor.u32 %v161_v16, %v160_v15  ;;  %v165_v24 = vshll.u32 %v164_v18, 23  ;;  %vm248_vm12 = vc.u32 %v684_v41, %v686_v43  ;;  %v249_v53 = vadd.s32 1, %v687_v23 }
  0xbd   :  { %v442_v42 = vadd.s32 4294967294, %v363_v30  ;;  %v174_v48 = vsel %vm89_vm11, %v173_v46, %v634_v17  ;;  %vm88_vm13 = vcmp.le.f32.partialorder %v87_v29, 0.7853982  ;;  %v381_v10 = vsub.s32 4, %v662_v54 }
  0xbe   :  { %v166_v31 = vor.u32 4788187, %v165_v24  ;;  %v169_v45 = vcvt.s32.f32 %v162_v21  ;;  %v250_v1 = vsel %vm248_vm12, %v249_v53, %v687_v23  ;;  %v176_v4 = vsel %vm88_vm13, 0, %v174_v48 }
  0xbf   :  { %vm443_vm10 = vcmp.lt.s32.totalorder %v442_v42, 0  ;;  %v251_v22 = vadd.s32 %v250_v1, %v246_v58  ;;  %v180_v57 = vadd.s32 3, %v176_v4  ;;  %vm297_vm14 = vcmp.lt.s32.totalorder %v570_v35, 0 }
  0xc0   :  { %v167_v44 = vand.u32 2147483647, %v166_v31  ;;  %v366_v49 = vsel %vm443_vm10, 0, %v442_v42  ;;  %vm714_vm15 = vcmp.le.f32.partialorder %v295_v39, 0.7853982  ;;  %v382_v16 = vsel %vm297_vm14, %v381_v10, %v662_v54 }
  0xc1   :  { %v367_v51 = vsub.s32 32, %v366_v49  ;;  %v371_v52 = vsub.s32 4294967266, %v366_v49  ;;  %v368_v59 = vshll.u32 %v359_v9, %v366_v49  ;;  %v252_v17 = vadd.s32 536870912, %v251_v22 }
  0xc2   :  { %v170_v32 = vmul.f32 %v169_v45, %v167_v44  ;;  %v181_v0 = vand.u32 3, %v180_v57  ;;  %v384_v39 = vsel %vm714_vm15, 0, %v382_v16  ;;  %vm179_vm4 = vweird.f32 %v566_v26 }
  0xc3   :  { %v369_v61 = vshrl.u32 %v351_v50, %v367_v51  ;;  %v372_v63 = vadd.s32 127, %v371_v52  ;;  %v707_v6 = vshrl.u32 %v252_v17, 30  ;;  %v388_v33 = vadd.s32 3, %v384_v39 }
  0xc4   :  { %v171_v56 = vxor.u32 2147483648, %v170_v32  ;;  %vm186_vm1 = vcmp.eq.s32.totalorder %v181_v0, 2  ;;  %vm183_vm2 = vcmp.eq.s32.totalorder %v181_v0, 0  ;;  %vm182_vm3 = vcmp.lt.s32.totalorder %v181_v0, 2 }
  0xc5   :  { %v370_v62 = vor.u32 %v369_v61, %v368_v59  ;;  %v373_v3 = vshll.u32 %v372_v63, 23  ;;  %v254_v29 = vshll.u32 %v707_v6, 30  ;;  %v247_v42 = vadd.s32 %v686_v43, %v684_v41 }
  0xc6   :  { %v172_v19 = vsel %vm89_vm11, %v171_v56, %v170_v32  ;;  %v389_v45 = vand.u32 3, %v388_v33  ;;  %vm387_vm9 = vweird.f32 %v570_v35  ;;  %vm193_vm10 = vcmp.lt.s32.totalorder %v574_v37, 0 }
  0xc7   :  { %v175_v2 = vsel %vm88_vm13, %v566_v26, %v172_v19  ;;  %v374_v5 = vor.u32 4788187, %v373_v3  ;;  %v377_v9 = vcvt.s32.f32 %v370_v62  ;;  %v255_v11 = vsub.s32 %v251_v22, %v254_v29 }
  0xc8   :  { %468 = vcosq.f32 %v175_v2  ;;  %vm394_vm6 = vcmp.eq.s32.totalorder %v389_v45, 2  ;;  %vm391_vm7 = vcmp.eq.s32.totalorder %v389_v45, 0  ;;  %vm390_vm8 = vcmp.lt.s32.totalorder %v389_v45, 2 }
  0xc9   :  { %470 = vsinq.f32 %v175_v2  ;;  %v375_v60 = vand.u32 2147483647, %v374_v5  ;;  %v257_v13 = vsub.s32 0, %v255_v11  ;;  %v277_v19 = vsub.s32 4, %v707_v6 }
  0xca   :  { %vm192_vm11 = vcmp.le.f32.partialorder %v191_v28, 0.7853982 }
  0xcb   :  { %v378_v8 = vmul.f32 %v377_v9, %v375_v60  ;;  %v437_v36 = vmin.u32 %v257_v13, %v255_v11  ;;  %v278_v62 = vsel %vm193_vm10, %v277_v19, %v707_v6 }
  0xcc   :  { %v280_v3 = vsel %vm192_vm11, 0, %v278_v62 }
  0xcd   :  { %v379_v12 = vxor.u32 2147483648, %v378_v8  ;;  %v259_v24 = vclz %v437_v36  ;;  %v284_v4 = vadd.s32 3, %v280_v3 }
  0xcf   :  { %v380_v15 = vsel %vm297_vm14, %v379_v12, %v378_v8  ;;  %v438_v27 = vadd.s32 4294967294, %v259_v24  ;;  %v285_v17 = vand.u32 3, %v284_v4 }
  0xd0   :  { %v383_v34 = vsel %vm714_vm15, %v570_v35, %v380_v15  ;;  %vm283_vm15 = vweird.f32 %v574_v37 }
  0xd1   :  { %472 = vcosq.f32 %v383_v34  ;;  %vm439_vm5 = vcmp.lt.s32.totalorder %v438_v27, 0  ;;  %vm290_vm12 = vcmp.eq.s32.totalorder %v285_v17, 2  ;;  %vm287_vm13 = vcmp.eq.s32.totalorder %v285_v17, 0 }
  0xd2   :  { %v469_v18 = vpop.eup %468  ;;  %474 = vsinq.f32 %v383_v34  ;;  %v262_v40 = vsel %vm439_vm5, 0, %v438_v27  ;;  %vm286_vm14 = vcmp.lt.s32.totalorder %v285_v17, 2 }
  0xd3   :  { %v471_v55 = vpop.eup %470  ;;  %v187_v20 = vxor.u32 2147483648, %v469_v18  ;;  %v263_v23 = vsub.s32 32, %v262_v40  ;;  %v267_v44 = vsub.s32 4294967266, %v262_v40  ;;  %v264_v47 = vshll.u32 %v255_v11, %v262_v40 }
  0xd4   :  { %v184_v21 = vxor.u32 2147483648, %v471_v55 }
  0xd5   :  { %v188_v25 = vsel %vm186_vm1, %v187_v20, %v471_v55  ;;  %v265_v32 = vshrl.u32 %v247_v42, %v263_v23  ;;  %v268_v26 = vadd.s32 127, %v267_v44 }
  0xd6   :  { %v185_v54 = vsel %vm183_vm2, %v469_v18, %v184_v21 }
  0xd7   :  { %v189_v30 = vsel %vm182_vm3, %v185_v54, %v188_v25  ;;  %v266_v52 = vor.u32 %v265_v32, %v264_v47  ;;  %v269_v53 = vshll.u32 %v268_v26, 23 }
  0xd8   :  { %v725_v31 = vsel %vm179_vm4, nan, %v189_v30 }
  0xd9   :  { %v402_v38 = vrot.slane %v725_v31, 5  ;;  %v270_v41 = vor.u32 4788187, %v269_v53  ;;  %v273_v59 = vcvt.s32.f32 %v266_v52 }
  0xdb   :  { %v411_v46 = vsel %vm31_vm0, %v555_v7, %v402_v38  ;;  %v473_v49 = vpop.eup %472  ;;  %v271_v7 = vand.u32 2147483647, %v270_v41 }
  0xdc   :  { %412 = vst [vmem:[#allocation2] sm:$0xff] %v411_v46  ;;  %v475_v50 = vpop.eup %474  ;;  %v395_v51 = vxor.u32 2147483648, %v473_v49 }
  0xdd   :  { %v392_v56 = vxor.u32 2147483648, %v475_v50  ;;  %v274_v1 = vmul.f32 %v273_v59, %v271_v7 }
  0xde   :  { %v396_v48 = vsel %vm394_vm6, %v395_v51, %v475_v50 }
  0xdf   :  { %v393_v43 = vsel %vm391_vm7, %v473_v49, %v392_v56  ;;  %v275_v22 = vxor.u32 2147483648, %v274_v1 }
  0xe0   :  { %v397_v58 = vsel %vm390_vm8, %v393_v43, %v396_v48 }
  0xe1   :  { %v398_v61 = vsel %vm387_vm9, nan, %v397_v58  ;;  %v276_v2 = vsel %vm193_vm10, %v275_v22, %v274_v1 }
  0xe2   :  { %v405_v63 = vrot.slane %v398_v61, 5  ;;  %v279_v35 = vsel %vm192_vm11, %v574_v37, %v276_v2 }
  0xe3   :  { %476 = vcosq.f32 %v279_v35 }
  0xe4   :  { %415 = vst [vmem:[#allocation2 + $0x18] sm:$0x7] %v405_v63  ;;  %478 = vsinq.f32 %v279_v35 }
  0xed   :  { %v477_v5 = vpop.eup %476 }
  0xee   :  { %v479_v57 = vpop.eup %478  ;;  %v291_v60 = vxor.u32 2147483648, %v477_v5 }
  0xef   :  { %v288_v9 = vxor.u32 2147483648, %v479_v57 }
  0xf0   :  { %v292_v29 = vsel %vm290_vm12, %v291_v60, %v479_v57 }
  0xf1   :  { %v289_v8 = vsel %vm287_vm13, %v477_v5, %v288_v9 }
  0xf2   :  { %v293_v28 = vsel %vm286_vm14, %v289_v8, %v292_v29 }
  0xf3   :  { %v294_v6 = vsel %vm283_vm15, nan, %v293_v28 }
  0xf4   :  { %v403_v10 = vrot.slane %v294_v6, 5 }
  0xf6   :  { %v404_v11 = vsel %vm31_vm0, %v402_v38, %v403_v10  ;;  %v406_v0 = vsel %vm31_vm0, %v403_v10, %v405_v63 }
  0xf7   :  { %413 = vst [vmem:[#allocation2 + $0x8] sm:$0xff] %v404_v11  ;;  %414 = vst [vmem:[#allocation2 + $0x10] sm:$0xff] %v406_v0 }
  0xf8   :  { %491 = shalt.err (!%p488_p4)
}
  0xf9   :  { %s492_s28 = scalar_lea.hbm %s757_s3, 512 }
  0xfa   :  { %p493_p5 = scmp.ne.s32.totalorder %s757_s3, %s492_s28  ;;  %p496_p6 = scmp.lt.u32.totalorder %s492_s28, %s757_s3 }
  0xfc   :  { %p498_p7 = pnand %p496_p6, %p493_p5 }
  0xfe   :  { %501 = shalt.err (!%p498_p7)
}
  0xff   :  { %s512_s6 = smov 128   ;;  %s513_s7 = smov 8  }
 0x100   :  { %427 = dma.vmem_to_hbm [thread:$0]  %s422_s1, 512, %s757_s3, [#allocation3], %s512_s6, %s512_s6, %s513_s7  }
 0x101   :  { %502 = dma.done.wait [#allocation3], 512  }
 0x102   :  { %503 = vsyncadd [#allocation3], 4294966784 }
 0x103   :  { %431 = vsyncpa [#allocation3], 1 }

</bundles_post_ra>
